<compile_context>
chip_gen: v7x
topology: tpu7x:2x2x1
jax: 0.10.0
libtpu: 0.0.40
codegen_flags: <defaults>
</compile_context>

<pallas_src>
import functools
import math

import jax
import jax.numpy as jnp
from jax import lax
from jax.experimental import pallas as pl
from jax.experimental.pallas import tpu as pltpu


def _round_up(a, b):
    return -(-a // b) * b


# ----------------------------- kernels -------------------------------------


def _fused_kernel(x_ref, w_ref, b_ref, o_ref, *, compute_dtype):
    # y = x @ W2.T + b2, contracting d_in of both operands directly
    # (dimension_numbers instead of materializing W2.T -> no XLU transpose).
    x = x_ref[...].astype(compute_dtype)
    y = lax.dot_general(
        x,
        w_ref[...],
        dimension_numbers=(((1,), (1,)), ((), ())),
        preferred_element_type=jnp.float32,
    )
    o_ref[...] = (y + b_ref[...]).astype(o_ref.dtype)


def _unfused_kernel(x_ref, w_ref, b_ref, s_ref, o_ref, *, compute_dtype):
    # k > d_out regime: h = x @ W.T + b ; y = h @ s.T.  h never touches HBM.
    x = x_ref[...].astype(compute_dtype)
    h = lax.dot_general(
        x,
        w_ref[...],
        dimension_numbers=(((1,), (1,)), ((), ())),
        preferred_element_type=jnp.float32,
    ) + b_ref[...]
    y = lax.dot_general(
        h.astype(compute_dtype),
        s_ref[...],
        dimension_numbers=(((1,), (1,)), ((), ())),
        preferred_element_type=jnp.float32,
    )
    o_ref[...] = y.astype(o_ref.dtype)


# ----------------------------- planning ------------------------------------


def _vmem_limit_bytes():
    """Generation-aware scoped-VMEM limit.

    32 MiB is safe everywhere (== v7x's scoped default, and explicitly raises
    v5e's 16 MiB default).  On 128 MiB-VMEM parts (v5e/v6e) allow more so
    bigger M tiles are realizable.
    """
    limit = 32 * 1024 * 1024
    try:
        cap = int(pltpu.get_tpu_info().vmem_capacity_bytes)
        if cap >= 128 * 1024 * 1024:
            limit = 64 * 1024 * 1024
    except Exception:
        pass
    return limit


def _choose_tm(m, row_in_bytes, row_out_bytes, resident_bytes, align, budget):
    """Biggest M tile (multiple of `align`, <= 1024, <= m) that fits `budget`."""
    if m <= align:
        return max(int(m), 1)
    avail = max(budget - resident_bytes, 1 << 20)
    per_row = 2 * (row_in_bytes + row_out_bytes)  # double-buffered in/out tiles
    tm = avail // per_row
    tm = min(tm, 1024, m)
    if m >= 256:
        # Guarantee >= 2 grid steps so both v7x TensorCores get work.
        tm = min(tm, _round_up(pl.cdiv(m, 2), align))
    tm = max(align, (tm // align) * align)
    return int(tm)


# ----------------------------- wrapper --------------------------------------


def compatibility_forward(x, s, weight, bias, *, compute_dtype=jnp.float32,
                          out_dtype=None):
    """x: (..., d_in), s: (k, d_out), weight: (d_out, d_in), bias: (d_out,).

    compute_dtype=jnp.bfloat16 halves the dominant matmul-operand traffic on
    v6e/v7x when the accuracy budget allows; accumulation stays f32 either way.
    out_dtype defaults to x.dtype.
    """
    *lead, d_in = x.shape
    d_out = weight.shape[0]
    k = s.shape[0]
    m = math.prod(lead) if lead else 1
    if out_dtype is None:
        out_dtype = x.dtype

    # No pad, no cast: the kernel casts each tile; the grid handles raggedness.
    x2d = x.reshape(m, d_in)

    w_item = jnp.dtype(compute_dtype).itemsize
    x_item = jnp.dtype(x2d.dtype).itemsize
    out_item = jnp.dtype(out_dtype).itemsize
    align = {4: 8, 2: 16, 1: 32}.get(w_item, 8)  # sublane packing of compute dtype

    d_in_lanes = _round_up(d_in, 128)
    d_out_lanes = _round_up(d_out, 128)
    k_lanes = _round_up(k, 128)

    vmem_limit = _vmem_limit_bytes()
    budget = vmem_limit - (2 << 20)  # headroom for Mosaic-internal scratch

    if k <= d_out:
        # ---- Refold: tiny one-time matmuls in plain JAX ----
        w2 = jnp.dot(s, weight, preferred_element_type=jnp.float32)
        w2 = w2.astype(compute_dtype)                                  # (k, d_in)
        b2 = jnp.dot(s, bias, preferred_element_type=jnp.float32)
        b2 = b2.reshape(1, k)                                          # (1, k) f32

        # Resident blocks are still double-buffered by Pallas -> charge 2x.
        resident = 2 * (_round_up(k, align) * d_in_lanes * w_item + k_lanes * 4)
        row_in = d_in_lanes * x_item
        row_out = k_lanes * out_item
        tm = _choose_tm(m, row_in, row_out, resident, align, budget)
        grid = (pl.cdiv(m, tm),)

        cost = pl.CostEstimate(
            flops=2 * m * d_in * k,
            transcendentals=0,
            bytes_accessed=(m * d_in * x_item + k * d_in * w_item + k * 4
                            + m * k * out_item),
        )

        out2d = pl.pallas_call(
            functools.partial(_fused_kernel, compute_dtype=compute_dtype),
            out_shape=jax.ShapeDtypeStruct((m, k), out_dtype),
            grid=grid,
            in_specs=[
                pl.BlockSpec((tm, d_in), lambda i: (i, 0)),   # x tile, pipelined
                pl.BlockSpec((k, d_in), lambda i: (0, 0)),    # W2, VMEM-resident
                pl.BlockSpec((1, k), lambda i: (0, 0)),       # b2, VMEM-resident
            ],
            out_specs=pl.BlockSpec((tm, k), lambda i: (i, 0)),
            compiler_params=pltpu.CompilerParams(
                dimension_semantics=("parallel",),
                vmem_limit_bytes=vmem_limit,
            ),
            cost_estimate=cost,
        )(x2d, w2, b2)
    else:
        # ---- k > d_out: refolding would inflate FLOPs/weights; fuse both
        # matmuls in-kernel instead (intermediate stays on-chip). ----
        w_c = weight.astype(compute_dtype)                    # (d_out, d_in)
        s_c = s.astype(compute_dtype)                         # (k, d_out)
        b_c = bias.astype(jnp.float32).reshape(1, d_out)      # (1, d_out)

        resident = 2 * (_round_up(d_out, align) * d_in_lanes * w_item
                        + d_out_lanes * 4
                        + _round_up(k, align) * d_out_lanes * w_item)
        row_in = d_in_lanes * x_item
        row_out = k_lanes * out_item + d_out_lanes * 4        # out tile + h
        tm = _choose_tm(m, row_in, row_out, resident, align, budget)
        grid = (pl.cdiv(m, tm),)

        cost = pl.CostEstimate(
            flops=2 * m * d_in * d_out + 2 * m * d_out * k,
            transcendentals=0,
            bytes_accessed=(m * d_in * x_item + d_out * d_in * w_item
                            + k * d_out * w_item + d_out * 4 + m * k * out_item),
        )

        out2d = pl.pallas_call(
            functools.partial(_unfused_kernel, compute_dtype=compute_dtype),
            out_shape=jax.ShapeDtypeStruct((m, k), out_dtype),
            grid=grid,
            in_specs=[
                pl.BlockSpec((tm, d_in), lambda i: (i, 0)),     # x tile, pipelined
                pl.BlockSpec((d_out, d_in), lambda i: (0, 0)),  # W, resident
                pl.BlockSpec((1, d_out), lambda i: (0, 0)),     # b, resident
                pl.BlockSpec((k, d_out), lambda i: (0, 0)),     # s, resident
            ],
            out_specs=pl.BlockSpec((tm, k), lambda i: (i, 0)),
            compiler_params=pltpu.CompilerParams(
                dimension_semantics=("parallel",),
                vmem_limit_bytes=vmem_limit,
            ),
            cost_estimate=cost,
        )(x2d, w_c, b_c, s_c)

    return out2d.reshape(*lead, k)


if __name__ == "__main__":
    # Small shapes consistent with the forward pass.
    batch, seq, d_in, d_out, k = 2, 8, 32, 64, 16

    key = jax.random.PRNGKey(0)
    kx, ks, kw, kb = jax.random.split(key, 4)

    x = jax.random.normal(kx, (batch, seq, d_in), dtype=jnp.float32)
    s = jax.random.normal(ks, (k, d_out), dtype=jnp.float32)

    # Deterministic parameter init (nn.Linear-style uniform bound).
    bound = 1.0 / (d_in ** 0.5)
    weight = jax.random.uniform(kw, (d_out, d_in), jnp.float32, -bound, bound)
    bias = jax.random.uniform(kb, (d_out,), jnp.float32, -bound, bound)

    y = compatibility_forward(x, s, weight, bias)
    y = jax.block_until_ready(y)

    # Pure-JAX reference (original op order).
    ref = (x @ weight.T + bias) @ s.T
    assert y.shape == (batch, seq, k)
    assert jnp.allclose(y, ref, atol=1e-3, rtol=1e-3)

    # Exercise the k > d_out fallback path once as well (small shapes).
    k_big = 96
    s_big = jax.random.normal(ks, (k_big, d_out), dtype=jnp.float32)
    y2 = jax.block_until_ready(compatibility_forward(x, s_big, weight, bias))
    ref2 = (x @ weight.T + bias) @ s_big.T
    assert jnp.allclose(y2, ref2, atol=1e-3, rtol=1e-3)

    print("KERNEL_OK")
</pallas_src>

<mosaic_0001>
module attributes {stable_mosaic.version = 11 : i64} {
  func.func @_fused_kernel(%arg0: i32, %arg1: memref<16x32xf32, #tpu.memory_space<vmem>>, %arg2: memref<16x32xf32, #tpu.memory_space<vmem>>, %arg3: memref<1x16xf32, #tpu.memory_space<vmem>>, %arg4: memref<16x16xf32, #tpu.memory_space<vmem>>) attributes {dimension_semantics = [#tpu.dimension_semantics<parallel>], iteration_bounds = array<i64: 1>, scalar_prefetch = 0 : i64, scratch_operands = 0 : i64, tpu.core_type = #tpu.core_type<tc>, window_params = [{transform_indices = @transform_0, window_bounds = array<i64: 16, 32>}, {pipeline_mode = #tpu.pipeline_mode<synchronous>, transform_indices = @transform_1, window_bounds = array<i64: 16, 32>}, {pipeline_mode = #tpu.pipeline_mode<synchronous>, transform_indices = @transform_2, window_bounds = array<i64: 1, 16>}, {transform_indices = @transform_3, window_bounds = array<i64: 16, 16>}]} {
    %c0 = arith.constant 0 : index
    %c0_0 = arith.constant 0 : index
    %0 = vector.load %arg1[%c0, %c0_0] : memref<16x32xf32, #tpu.memory_space<vmem>>, vector<16x32xf32>
    %c0_1 = arith.constant 0 : index
    %c0_2 = arith.constant 0 : index
    %1 = vector.load %arg2[%c0_1, %c0_2] : memref<16x32xf32, #tpu.memory_space<vmem>>, vector<16x32xf32>
    %cst = arith.constant dense<0.000000e+00> : vector<16x16xf32>
    %2 = tpu.matmul %0, %1, %cst {dimension_numbers = #tpu.dot_dimension_numbers<[1], [1], [0], [0], [0, 0, 1, 0], [], []>} : vector<16x32xf32>, vector<16x32xf32>, vector<16x16xf32> -> vector<16x16xf32>
    %c0_3 = arith.constant 0 : index
    %c0_4 = arith.constant 0 : index
    %3 = vector.load %arg3[%c0_3, %c0_4] : memref<1x16xf32, #tpu.memory_space<vmem>>, vector<1x16xf32>
    %4 = vector.broadcast %3 : vector<1x16xf32> to vector<16x16xf32>
    %5 = arith.addf %2, %4 : vector<16x16xf32>
    %c0_5 = arith.constant 0 : index
    %c0_6 = arith.constant 0 : index
    %6 = vector.load %arg4[%c0_5, %c0_6] : memref<16x16xf32, #tpu.memory_space<vmem>>, vector<16x16xf32>
    tpu.vector_store %arg4[%c0_5, %c0_6], %5 {strides = array<i32>} : memref<16x16xf32, #tpu.memory_space<vmem>>, vector<16x16xf32>,
    return
  }
  func.func @transform_0(%arg0: i32) -> (i32, i32) {
    %c0_i32 = arith.constant 0 : i32
    %c0_i32_0 = arith.constant 0 : i32
    return %arg0, %c0_i32 : i32, i32
  }
  func.func @transform_1(%arg0: i32) -> (i32, i32) {
    %c0_i32 = arith.constant 0 : i32
    %c0_i32_0 = arith.constant 0 : i32
    %c0_i32_1 = arith.constant 0 : i32
    return %c0_i32, %c0_i32_0 : i32, i32
  }
  func.func @transform_2(%arg0: i32) -> (i32, i32) {
    %c0_i32 = arith.constant 0 : i32
    %c0_i32_0 = arith.constant 0 : i32
    %c0_i32_1 = arith.constant 0 : i32
    return %c0_i32, %c0_i32_0 : i32, i32
  }
  func.func @transform_3(%arg0: i32) -> (i32, i32) {
    %c0_i32 = arith.constant 0 : i32
    %c0_i32_0 = arith.constant 0 : i32
    return %arg0, %c0_i32 : i32, i32
  }
}

</mosaic_0001>

<bundles_post_ra>
// kernel: tpu_custom_call.1
= control target key start
LH: loop header
LB: loop body
LE: loop exit
PB: predicated region body
PF: predicated region fallthrough
CT: control target
= control target key end

     0   :  { %8 = vsyncpa [#allocation3], 0  ;;  %s335_s0 = inlined_call_operand.hbm [shape: f32[16,32], index: 0, kind: input, shape index: {}]   ;;  %s336_s1 = inlined_call_operand.hbm [shape: f32[16,32], index: 1, kind: input, shape index: {}]   ;;  %s337_s2 = inlined_call_operand.vmem [shape: f32[1,16], index: 2, kind: input, shape index: {}]   ;;  %s338_s3 = inlined_call_operand.hbm [shape: f32[16,16], index: 3, kind: output, shape index: {}]  }
   0x1   :  { %9 = vsyncpa [#allocation6], 0 }
   0x2   :  { %10 = vsyncpa [#allocation4], 0  ;;  %s262_s12 = smov [#allocation2]   ;;  %s190_s16 = scalar_lea.hbm %s335_s0, 256 }
   0x3   :  { %s16_s13 = sshll.u32 %s262_s12, 4  ;;  %p191_p0 = scmp.ne.s32.totalorder %s335_s0, %s190_s16  ;;  %s17_s13 = int_to_ptr.vmem [resolvable:$true] %s16_s13 }
   0x4   :  { %p194_p1 = scmp.lt.u32.totalorder %s190_s16, %s335_s0 }
   0x6   :  { %p196_p2 = pnand %p194_p1, %p191_p0 }
   0x8   :  { %199 = shalt.err (!%p196_p2)
}
   0x9   :  { %s200_s21 = scalar_lea.vmem %s17_s13, 256  ;;  %p205_p4 = scmp.lt.s32.totalorder %s17_s13, %s17_s13 }
   0xa   :  { %p201_p3 = scmp.ne.s32.totalorder %s17_s13, %s200_s21  ;;  %p206_p5 = scmp.lt.s32.totalorder %s200_s21, %s200_s21 }
   0xc   :  { %p207_p6 = por %p206_p5, %p205_p4 }
   0xe   :  { %p208_p7 = pnand %p207_p6, %p201_p3 }
  0x10   :  { %211 = shalt.err (!%p208_p7)
}
  0x11   :  { %s263_s22 = smov 128   ;;  %s264_s23 = smov 8  }
  0x12   :  { %22 = dma.hbm_to_vmem [thread:$0]  %s335_s0, 256, %s17_s13, [#allocation3], %s263_s22, %s263_s22, %s264_s23  }
  0x13   :  { %s265_s26 = smov [#allocation5]   ;;  %s212_s30 = scalar_lea.hbm %s336_s1, 256 }
  0x14   :  { %s28_s27 = sshll.u32 %s265_s26, 4  ;;  %p213_p8 = scmp.ne.s32.totalorder %s336_s1, %s212_s30  ;;  %s29_s27 = int_to_ptr.vmem [resolvable:$true] %s28_s27 }
  0x15   :  { %p216_p9 = scmp.lt.u32.totalorder %s212_s30, %s336_s1 }
  0x17   :  { %p218_p10 = pnand %p216_p9, %p213_p8 }
  0x19   :  { %221 = shalt.err (!%p218_p10)
}
  0x1a   :  { %s222_s8 = scalar_lea.vmem %s29_s27, 256  ;;  %p227_p12 = scmp.lt.s32.totalorder %s29_s27, %s29_s27 }
  0x1b   :  { %p223_p11 = scmp.ne.s32.totalorder %s29_s27, %s222_s8  ;;  %p228_p13 = scmp.lt.s32.totalorder %s222_s8, %s222_s8 }
  0x1d   :  { %p229_p0 = por %p228_p13, %p227_p12 }
  0x1f   :  { %p230_p1 = pnand %p229_p0, %p223_p11 }
  0x21   :  { %233 = shalt.err (!%p230_p1)
}
  0x22   :  { %34 = dma.hbm_to_vmem [thread:$0]  %s336_s1, 256, %s29_s27, [#allocation6], %s263_s22, %s263_s22, %s264_s23  }
  0x23   :  { %256 = dma.done.wait [#allocation3], 256  }
  0x24   :  { %257 = vsyncadd [#allocation3], 4294967040 }
  0x25   :  { %258 = dma.done.wait [#allocation6], 256  }
  0x26   :  { %259 = vsyncadd [#allocation6], 4294967040  ;;  %vm54_vm0 = vcmask 261120   ;;  %v45_v0 = vld [vmem:[#allocation5] sm:$0xff]  ;;  %v46_v1 = vld [vmem:[#allocation5 + $0x8] sm:$0xff]  ;;  %s266_s1 = smov [#allocation7]  }
  0x27   :  { %vm180_vm1 = vmpackc.low %vm54_vm0, %vm54_vm0  ;;  %v43_v2 = vld [vmem:[#allocation2] sm:$0xff]  ;;  %v179_v3 = vpack.c.bf16 %v46_v1, %v45_v0  ;;  %v44_v4 = vld [vmem:[#allocation2 + $0x8] sm:$0xff]  ;;  %s150_s12 = sshll.u32 %s266_s1, 4  ;;  %vm142_vm2 = vcmask 130048   ;;  %s151_s12 = int_to_ptr.vmem [resolvable:$true] %s150_s12 }
  0x28   :  { %176 = vmatprep.mubr.msk.f32.mxu0 %vm54_vm0, %v43_v2  ;;  %v163_v5 = vld [vmem:[%s337_s2] ss:$0 sm:$0xff]  ;;  %s234_s13 = scalar_lea.vmem %s151_s12, 256  ;;  %p239_p3 = scmp.lt.s32.totalorder %s151_s12, %s151_s12 }
  0x29   :  { %181 = vmatprep.subr.msk.bf16.mxu0 %vm180_vm1, %v179_v3  ;;  %p235_p2 = scmp.ne.s32.totalorder %s151_s12, %s234_s13  ;;  %p240_p4 = scmp.lt.s32.totalorder %s234_s13, %s234_s13 }
  0x2a   :  { %184 = vmatpush3.bf16.xpose.msk.msra.mxu0 %vm180_vm1, %v179_v3 }
  0x2b   :  { %p241_p5 = por %p240_p4, %p239_p3 }
  0x2d   :  { %p242_p6 = pnand %p241_p5, %p235_p2 }
  0x31   :  { %177 = vmatmul.mubr.msk.f32.vlgmr.msra.gmra.mrb[0].mxu0 %vm54_vm0, %v44_v4 }
 0x104   :  { %v178_v6 = vpop.f32.mrb[0].mxu0 }
 0x105   :  { %v139_v7 = vadd.f32 %v178_v6, %v163_v5  ;;  %v133_v8 = vpop.f32.mrb[1].mxu0 }
 0x106   :  { %v134_v9 = vadd.f32 %v163_v5, %v133_v8 }
 0x107   :  { %144 = vst.msk [vmem:[#allocation7 + $0x8] sm:$0xff] %vm142_vm2, %v139_v7 }
 0x108   :  { %143 = vst.msk [vmem:[#allocation7] sm:$0xff] %vm142_vm2, %v134_v9 }
 0x109   :  { %245 = shalt.err (!%p242_p6)
}
 0x10a   :  { %s246_s2 = scalar_lea.hbm %s338_s3, 256 }
 0x10b   :  { %p247_p7 = scmp.ne.s32.totalorder %s338_s3, %s246_s2  ;;  %p250_p8 = scmp.lt.u32.totalorder %s246_s2, %s338_s3 }
 0x10d   :  { %p252_p9 = pnand %p250_p8, %p247_p7 }
 0x10f   :  { %255 = shalt.err (!%p252_p9)
}
 0x110   :  { %156 = dma.vmem_to_hbm [thread:$0]  %s151_s12, 256, %s338_s3, [#allocation4], %s263_s22, %s263_s22, %s264_s23  }
 0x111   :  { %260 = dma.done.wait [#allocation4], 256  }
 0x112   :  { %261 = vsyncadd [#allocation4], 4294967040 }
 0x113   :  { %160 = vsyncpa [#allocation3], 1 }
 0x114   :  { %161 = vsyncpa [#allocation6], 1 }
 0x115   :  { %162 = vsyncpa [#allocation4], 1 }

</bundles_post_ra>
